<compile_context>
chip_gen: v6e
topology: v6e:2x2x1
jax: 0.10.0
libtpu: 0.0.40
codegen_flags: <defaults>
</compile_context>

<pallas_src>
import numpy as np
import jax
import jax.numpy as jnp
from jax.experimental import pallas as pl
from jax.experimental.pallas import tpu as pltpu


def _selection_matrix(n_in, n_out, kernel_size, stride, padding):
    """A[i, o] = 1 iff input index i lies inside the o-th stride-`stride` window
    of size `kernel_size` (zero padding folded in). Host-side compile-time const."""
    i = np.arange(n_in)[:, None]
    o = np.arange(n_out)[None, :]
    lo = stride * o - padding
    hi = lo + kernel_size - 1
    return ((i >= lo) & (i <= hi)).astype(np.float32)


def _pick_channels_per_block(nc, d, od, hw, ohow, vmem_budget_bytes):
    """Channels per grid step: as many as fit the VMEM budget, but keep >= 2
    grid steps (v7x has 2 TensorCores / double-buffer overlap) and keep the
    block sublane extents (TC*D, TC*OD) aligned to 8."""
    fixed = 4 * 2 * hw * ohow                                   # resident kron(a_h, a_w)
    per_channel = 4 * (3 * d * hw + d * ohow + 3 * od * ohow)   # dbl-buffered blocks + temps
    budget = max(vmem_budget_bytes - fixed, per_channel)
    tc = max(1, min(nc, budget // per_channel))
    if nc >= 2:
        tc = min(tc, max(1, nc // 2))
    for t in range(int(tc), 0, -1):
        if nc % t == 0 and (t * d) % 8 == 0 and (t * od) % 8 == 0:
            return t
    return nc  # fall back to a single full block (block == full array dims)


def _spatial_norm3d_kernel(x_ref, a_hw_ref, a_d_ref, o_ref):
    # x_ref:    (TC*D, H*W)    rows = (channel, depth), lanes = flattened (h, w)
    # a_hw_ref: (H*W, OH*OW)   kron(a_h, a_w): 3x3 H/W window, stride 2, zero pad
    # a_d_ref:  (TC*OD, TC*D)  kron(I_TC, a_d^T): per-channel depth window
    # o_ref:    (TC*OD, OH*OW)
    x = x_ref[...].astype(jnp.float32)
    # H/W window-sum: contraction over the minor (lane) dim -> natural MXU matmul.
    t = jnp.dot(x * x, a_hw_ref[...], preferred_element_type=jnp.float32)
    # Depth window-sum: (TC*OD, TC*D) @ (TC*D, OH*OW) -> natural MXU orientation,
    # keeps OH*OW in the lane dim for a lane-dense store.
    y = jnp.dot(a_d_ref[...], t, preferred_element_type=jnp.float32)
    o_ref[...] = jnp.sqrt(y).astype(o_ref.dtype)


def spatial_norm3d(x, kernel_size=3, stride=2, padding=1,
                   vmem_budget_bytes=20 * 1024 * 1024):
    """x: (N, C, D, H, W) -> (N, C, OD, OH, OW)."""
    N, C, D, H, W = x.shape

    def _out(n):
        return (n + 2 * padding - kernel_size) // stride + 1

    OD, OH, OW = _out(D), _out(H), _out(W)
    NC, HW, OHOW = N * C, H * W, OH * OW

    TC = _pick_channels_per_block(NC, D, OD, HW, OHOW, vmem_budget_bytes)
    grid = NC // TC

    # Constant selection operators, built once in the wrapper (not per grid step).
    a_d = _selection_matrix(D, OD, kernel_size, stride, padding)   # (D, OD)
    a_h = _selection_matrix(H, OH, kernel_size, stride, padding)   # (H, OH)
    a_w = _selection_matrix(W, OW, kernel_size, stride, padding)   # (W, OW)
    a_hw = jnp.asarray(np.kron(a_h, a_w))                                   # (H*W, OH*OW)
    a_d_blk = jnp.asarray(np.kron(np.eye(TC, dtype=np.float32), a_d.T))     # (TC*OD, TC*D)
    # TODO(synk): for large spatial extents (H*W >~ 64*64) the dense kron(a_h, a_w)
    # operator stops scaling; switch to a separable W-only matmul + sublane H
    # reduction with spatial tiling for those shapes.

    # Lane-dense 2-D views (free bitcasts of contiguous HBM arrays).
    x2d = x.reshape(NC * D, HW)

    out = pl.pallas_call(
        _spatial_norm3d_kernel,
        out_shape=jax.ShapeDtypeStruct((NC * OD, OHOW), x.dtype),
        grid_spec=pltpu.PrefetchScalarGridSpec(
            num_scalar_prefetch=0,
            grid=(grid,),
            in_specs=[
                pl.BlockSpec((TC * D, HW), lambda i: (i, 0)),
                pl.BlockSpec((HW, OHOW), lambda i: (0, 0)),         # resident constant
                pl.BlockSpec((TC * OD, TC * D), lambda i: (0, 0)),  # resident constant
            ],
            out_specs=pl.BlockSpec((TC * OD, OHOW), lambda i: (i, 0)),
        ),
        compiler_params=pltpu.CompilerParams(
            dimension_semantics=("parallel",),
            vmem_limit_bytes=32 * 1024 * 1024,
        ),
    )(x2d, a_hw, a_d_blk)

    return out.reshape(N, C, OD, OH, OW)


def _reference(x, kernel_size=3, stride=2, padding=1):
    # Independent reference: windowed sum of squares via reduce_window + sqrt.
    x2 = jnp.square(x.astype(jnp.float32))
    summed = jax.lax.reduce_window(
        x2, 0.0, jax.lax.add,
        window_dimensions=(1, 1, kernel_size, kernel_size, kernel_size),
        window_strides=(1, 1, stride, stride, stride),
        padding=((0, 0), (0, 0),
                 (padding, padding), (padding, padding), (padding, padding)),
    )
    return jnp.sqrt(summed).astype(x.dtype)


if __name__ == "__main__":
    key = jax.random.PRNGKey(0)
    N, C, D, H, W = 2, 4, 16, 16, 16
    x = jax.random.normal(key, (N, C, D, H, W), dtype=jnp.float32)

    y = jax.block_until_ready(spatial_norm3d(x))
    y_ref = jax.block_until_ready(_reference(x))

    assert y.shape == y_ref.shape, (y.shape, y_ref.shape)
    assert jnp.allclose(y, y_ref, atol=1e-4, rtol=1e-4), "mismatch vs reference"

    print("KERNEL_OK")
</pallas_src>

<mosaic_0001>
module attributes {stable_mosaic.version = 11 : i64} {
  func.func @_spatial_norm3d_kernel(%arg0: i32, %arg1: memref<64x256xf32, #tpu.memory_space<vmem>>, %arg2: memref<256x64xf32, #tpu.memory_space<vmem>>, %arg3: memref<32x64xf32, #tpu.memory_space<vmem>>, %arg4: memref<32x64xf32, #tpu.memory_space<vmem>>) attributes {dimension_semantics = [#tpu.dimension_semantics<parallel>], iteration_bounds = array<i64: 2>, scalar_prefetch = 0 : i64, scratch_operands = 0 : i64, tpu.core_type = #tpu.core_type<tc>, window_params = [{transform_indices = @transform_0, window_bounds = array<i64: 64, 256>}, {pipeline_mode = #tpu.pipeline_mode<synchronous>, transform_indices = @transform_1, window_bounds = array<i64: 256, 64>}, {pipeline_mode = #tpu.pipeline_mode<synchronous>, transform_indices = @transform_2, window_bounds = array<i64: 32, 64>}, {transform_indices = @transform_3, window_bounds = array<i64: 32, 64>}]} {
    %c0 = arith.constant 0 : index
    %c0_0 = arith.constant 0 : index
    %0 = vector.load %arg1[%c0, %c0_0] : memref<64x256xf32, #tpu.memory_space<vmem>>, vector<64x256xf32>
    %1 = arith.mulf %0, %0 : vector<64x256xf32>
    %c0_1 = arith.constant 0 : index
    %c0_2 = arith.constant 0 : index
    %2 = vector.load %arg2[%c0_1, %c0_2] : memref<256x64xf32, #tpu.memory_space<vmem>>, vector<256x64xf32>
    %cst = arith.constant dense<0.000000e+00> : vector<64x64xf32>
    %3 = tpu.matmul %1, %2, %cst {dimension_numbers = #tpu.dot_dimension_numbers<[1], [0], [0], [1], [0, 0, 1, 1], [], []>} : vector<64x256xf32>, vector<256x64xf32>, vector<64x64xf32> -> vector<64x64xf32>
    %c0_3 = arith.constant 0 : index
    %c0_4 = arith.constant 0 : index
    %4 = vector.load %arg3[%c0_3, %c0_4] : memref<32x64xf32, #tpu.memory_space<vmem>>, vector<32x64xf32>
    %cst_5 = arith.constant dense<0.000000e+00> : vector<32x64xf32>
    %5 = tpu.matmul %4, %3, %cst_5 {dimension_numbers = #tpu.dot_dimension_numbers<[1], [0], [0], [1], [0, 0, 1, 1], [], []>} : vector<32x64xf32>, vector<64x64xf32>, vector<32x64xf32> -> vector<32x64xf32>
    %6 = math.sqrt %5 : vector<32x64xf32>
    %c0_6 = arith.constant 0 : index
    %c0_7 = arith.constant 0 : index
    %7 = vector.load %arg4[%c0_6, %c0_7] : memref<32x64xf32, #tpu.memory_space<vmem>>, vector<32x64xf32>
    tpu.vector_store %arg4[%c0_6, %c0_7], %6 {strides = array<i32>} : memref<32x64xf32, #tpu.memory_space<vmem>>, vector<32x64xf32>,
    return
  }
  func.func @transform_0(%arg0: i32) -> (i32, i32) {
    %c0_i32 = arith.constant 0 : i32
    %c0_i32_0 = arith.constant 0 : i32
    return %arg0, %c0_i32 : i32, i32
  }
  func.func @transform_1(%arg0: i32) -> (i32, i32) {
    %c0_i32 = arith.constant 0 : i32
    %c0_i32_0 = arith.constant 0 : i32
    %c0_i32_1 = arith.constant 0 : i32
    return %c0_i32, %c0_i32_0 : i32, i32
  }
  func.func @transform_2(%arg0: i32) -> (i32, i32) {
    %c0_i32 = arith.constant 0 : i32
    %c0_i32_0 = arith.constant 0 : i32
    %c0_i32_1 = arith.constant 0 : i32
    return %c0_i32, %c0_i32_0 : i32, i32
  }
  func.func @transform_3(%arg0: i32) -> (i32, i32) {
    %c0_i32 = arith.constant 0 : i32
    %c0_i32_0 = arith.constant 0 : i32
    return %arg0, %c0_i32 : i32, i32
  }
}

</mosaic_0001>

<bundles_post_ra>
// kernel: tpu_custom_call.1
= control target key start
LH: loop header
LB: loop body
LE: loop exit
PB: predicated region body
PF: predicated region fallthrough
CT: control target
= control target key end

     0   :  { %8 = vsyncpa [#allocation3], 0  ;;  %s1036_s0 = inlined_call_operand.vmem [shape: f32[128,256], index: 0, kind: input, shape index: {}]   ;;  %s1037_s1 = inlined_call_operand.vmem [shape: f32[256,64], index: 1, kind: input, shape index: {}]   ;;  %s1038_s2 = inlined_call_operand.vmem [shape: f32[32,64], index: 2, kind: input, shape index: {}]   ;;  %s1039_s3 = inlined_call_operand.hbm [shape: f32[64,64], index: 3, kind: output, shape index: {}]  }
   0x1   :  { %10 = vsyncpa [#allocation3 + $0x1], 0  ;;  %s797_s12 = smov 0   ;;  %s799_s13 = smov 0  }
   0x2   :  { %s801_s14 = smov 0   ;;  %s803_s15 = smov 0  }
   0x3 LB: > { %s818_s16 = sadd.s32 4294967295, %s772_s15   ;;  %s554_s17 = sadd.s32 4294967294, %s772_s15   ;;  %s772_s15 = sphi %s803_s15, %s1045_s15   ;;  %s768_s14 = sphi %s801_s14, %s1044_s14   ;;  %s764_s13 = sphi %s799_s13, %s1043_s13   ;;  %s760_s12 = sphi %s797_s12, %s1042_s12  }
   0x4   : > { %s822_s18 = sadd.s32 1, %s772_s15   ;;  %s91_s19 = sadd.s32 1, %s768_s14 }
   0x5   : > { %s88_s20 = ssub.s32 %s772_s15, %s822_s18  ;;  %p101_p0 = scmp.ne.s32.totalorder %s768_s14, %s764_s13 }
   0x6   : > { %p89_p1 = scmp.eq.s32.totalorder %s88_s20, 0  ;;  %p102_p2 = scmp.eq.s32.totalorder %s818_s16, 1 }
   0x7   : > { %p107_p3 = scmp.ne.s32.totalorder %s764_s13, %s760_s12  ;;  %p108_p4 = scmp.eq.s32.totalorder %s554_s17, 1 }
   0x8   : > { %s833_s21 = scalar_select %p89_p1, %s768_s14, %s91_s19  }
   0x9   : > { %p835_p5 = por %p102_p2, %p101_p0  ;;  %p839_p6 = por %p108_p4, %p107_p3 }
   0xa   : > { %p557_p7 = scmp.ge.s32.totalorder %s772_s15, 1  ;;  %p142_p8 = scmp.lt.s32.totalorder %s772_s15, 3 }
   0xc   : > { %p143_p9 = pnand %p557_p7, %p142_p8 }
   0xd   : > { %s559_s30 = sshll.u32 (!%p143_p9), %s818_s16, 3  ;;  %s164_s5 = sand.u32 (!%p143_p9), 1, %s764_s13  }
   0xe   : > { %146 = sbr.rel (%p143_p9) target bundleno = 524 (0x20c), region = 32  ;;  %p168_p10 = scmp.lt.s32.totalorder (!%p143_p9), %s559_s30, 15 }
   0xf   : > { %s558_s6 = sshll.u32 (!%p143_p9), %s164_s5, 5  ;;  %s572_s7 = sshll.u32 (!%p143_p9), %s818_s16, 9 }
  0x10   : > { %s988_s11 = scalar_lea.hbm (!%p143_p9), %s1039_s3, %s572_s7  ;;  %s996_s16 = scalar_lea.sflag (!%p143_p9), [#allocation3], %s164_s5 }
  0x11   : > { %s774_s19 = smov (!%p143_p9), [#allocation2]  }
  0x13   : > { %v238_v0 = vld [vmem:[%s1037_s1 + $0xf8] sm:$0xff]  ;;  %v237_v2 = vld [vmem:[%s1037_s1 + $0xf0] sm:$0xff]  ;;  %v236_v4 = vld [vmem:[%s1037_s1 + $0xe8] sm:$0xff]  ;;  %s1047_s30 = smov (!%p168_p10, %s559_s30), 15  ;;  %vm348_vm0 = vcmask 523264  }
  0x14   : > { %v222_v1 = vld [vmem:[%s1037_s1 + $0x78] sm:$0xff]  ;;  %573 = vmatprep.subr.mxu0 %v238_v0  ;;  %v221_v3 = vld [vmem:[%s1037_s1 + $0x70] sm:$0xff]  ;;  %v220_v5 = vld [vmem:[%s1037_s1 + $0x68] sm:$0xff]  ;;  %s571_s20 = sshll.u32 %s1047_s30, 4  ;;  %s166_s30 = scalar_lea.vmem [#allocation2], %s558_s6 }
  0x15   : > { %574 = vmatpush3.msra.mxu0 %v222_v1  ;;  %v235_v6 = vld [vmem:[%s1037_s1 + $0xe0] sm:$0xff]  ;;  %v234_v8 = vld [vmem:[%s1037_s1 + $0xd8] sm:$0xff]  ;;  %s879_s4 = scalar_lea.vmem %s1036_s0, %s571_s20  ;;  %v233_v10 = vld [vmem:[%s1037_s1 + $0xd0] sm:$0xff]  ;;  %s492_s8 = sshll.u32 %s166_s30, 4  ;;  %s990_s8 = int_to_ptr.vmem [resolvable:$true] %s492_s8 }
  0x16   : > { %575 = vmatprep.subr.mxu0 %v237_v2  ;;  %v219_v7 = vld [vmem:[%s1037_s1 + $0x60] sm:$0xff]  ;;  %v218_v9 = vld [vmem:[%s1037_s1 + $0x58] sm:$0xff]  ;;  %v217_v11 = vld [vmem:[%s1037_s1 + $0x50] sm:$0xff]  ;;  %s712_s17 = scalar_lea.vmem %s990_s8, 512  ;;  %s716_s20 = sshll.u32 %s774_s19, 4  ;;  %s717_s20 = int_to_ptr.vmem [resolvable:$false] %s716_s20 }
  0x17   : > { %576 = vmatpush3.msra.mxu0 %v221_v3  ;;  %v232_v12 = vld [vmem:[%s1037_s1 + $0xc8] sm:$0xff]  ;;  %v231_v16 = vld [vmem:[%s1037_s1 + $0xc0] sm:$0xff]  ;;  %v230_v18 = vld [vmem:[%s1037_s1 + $0xb8] sm:$0xff]  ;;  %p713_p11 = scmp.ne.s32.totalorder %s990_s8, %s712_s17  ;;  %s718_s24 = scalar_lea.vmem %s717_s20, 1024 }
  0x18   : > { %577 = vmatprep.subr.mxu0 %v236_v4  ;;  %v176_v13 = vld [vmem:[%s879_s4 + $0x8] sm:$0xff]  ;;  %v215_v17 = vld [vmem:[%s1037_s1 + $0x40] sm:$0xff]  ;;  %v214_v19 = vld [vmem:[%s1037_s1 + $0x38] sm:$0xff]  ;;  %p719_p0 = scmp.lt.s32.totalorder %s990_s8, %s717_s20  ;;  %p720_p1 = scmp.lt.s32.totalorder %s718_s24, %s712_s17 }
  0x19   : > { %578 = vmatpush3.msra.mxu0 %v220_v5  ;;  %v216_v14 = vld [vmem:[%s1037_s1 + $0x48] sm:$0xff]  ;;  %v192_v15 = vmul.f32 %v176_v13, %v176_v13  ;;  %v229_v20 = vld [vmem:[%s1037_s1 + $0xb0] sm:$0xff]  ;;  %v227_v24 = vld [vmem:[%s1037_s1 + $0xa0] sm:$0xff]  ;;  %p714_p12 = pnand %p713_p11, %p835_p5 }
  0x1a   : > { %579 = vmatprep.subr.mxu0 %v235_v6  ;;  %v213_v21 = vld [vmem:[%s1037_s1 + $0x30] sm:$0xff]  ;;  %v228_v22 = vld [vmem:[%s1037_s1 + $0xa8] sm:$0xff]  ;;  %v211_v25 = vld [vmem:[%s1037_s1 + $0x20] sm:$0xff]  ;;  %p721_p2 = por %p720_p1, %p719_p0 }
  0x1b   : > { %580 = vmatpush3.msra.mxu0 %v219_v7  ;;  %303 = vmatprep.mubr.f32.mxu0 %v192_v15  ;;  %v212_v23 = vld [vmem:[%s1037_s1 + $0x28] sm:$0xff]  ;;  %v226_v26 = vld [vmem:[%s1037_s1 + $0x98] sm:$0xff]  ;;  %v225_v28 = vld [vmem:[%s1037_s1 + $0x90] sm:$0xff]  ;;  %p715_p13 = pneg %p714_p12 }
  0x1c   : > { %581 = vmatprep.subr.mxu0 %v234_v8  ;;  %v210_v27 = vld [vmem:[%s1037_s1 + $0x18] sm:$0xff]  ;;  %v209_v29 = vld [vmem:[%s1037_s1 + $0x10] sm:$0xff]  ;;  %v224_v30 = vld [vmem:[%s1037_s1 + $0x88] sm:$0xff] }
  0x1d   : > { %582 = vmatpush3.msra.mxu0 %v218_v9  ;;  %v175_v31 = vld [vmem:[%s879_s4] sm:$0xff]  ;;  %v208_v32 = vld [vmem:[%s1037_s1 + $0x8] sm:$0xff]  ;;  %v178_v33 = vld [vmem:[%s879_s4 + $0x18] sm:$0xff]  ;;  %p722_p3 = pnand %p721_p2, %p715_p13 }
  0x1e   : > { %583 = vmatprep.subr.mxu0 %v233_v10  ;;  %v223_v34 = vld [vmem:[%s1037_s1 + $0x80] sm:$0xff]  ;;  %v191_v36 = vmul.f32 %v175_v31, %v175_v31  ;;  %v194_v37 = vmul.f32 %v178_v33, %v178_v33  ;;  %v177_v38 = vld [vmem:[%s879_s4 + $0x10] sm:$0xff]  ;;  %v180_v39 = vld [vmem:[%s879_s4 + $0x28] sm:$0xff] }
  0x1f   : > { %584 = vmatpush3.msra.mxu0 %v217_v11  ;;  %v207_v35 = vld [vmem:[%s1037_s1] sm:$0xff]  ;;  %v193_v40 = vmul.f32 %v177_v38, %v177_v38  ;;  %v196_v41 = vmul.f32 %v180_v39, %v180_v39  ;;  %v182_v43 = vld [vmem:[%s879_s4 + $0x38] sm:$0xff]  ;;  %v181_v46 = vld [vmem:[%s879_s4 + $0x30] sm:$0xff] }
  0x20   : > { %585 = vmatprep.subr.mxu0 %v232_v12  ;;  %v179_v42 = vld [vmem:[%s879_s4 + $0x20] sm:$0xff]  ;;  %v198_v45 = vmul.f32 %v182_v43, %v182_v43  ;;  %v184_v47 = vld [vmem:[%s879_s4 + $0x48] sm:$0xff]  ;;  %v197_v48 = vmul.f32 %v181_v46, %v181_v46  ;;  %v186_v51 = vld [vmem:[%s879_s4 + $0x58] sm:$0xff] }
  0x21   : > { %586 = vmatpush3.msra.mxu0 %v216_v14  ;;  %v195_v44 = vmul.f32 %v179_v42, %v179_v42  ;;  %v200_v49 = vmul.f32 %v184_v47, %v184_v47  ;;  %v183_v50 = vld [vmem:[%s879_s4 + $0x40] sm:$0xff]  ;;  %v202_v53 = vmul.f32 %v186_v51, %v186_v51  ;;  %v185_v54 = vld [vmem:[%s879_s4 + $0x50] sm:$0xff]  ;;  %v188_v55 = vld [vmem:[%s879_s4 + $0x68] sm:$0xff] }
  0x22   : > { %587 = vmatprep.subr.mxu0 %v231_v16  ;;  %v199_v52 = vmul.f32 %v183_v50, %v183_v50  ;;  %v201_v56 = vmul.f32 %v185_v54, %v185_v54  ;;  %v204_v57 = vmul.f32 %v188_v55, %v188_v55  ;;  %v187_v58 = vld [vmem:[%s879_s4 + $0x60] sm:$0xff]  ;;  %v190_v59 = vld [vmem:[%s879_s4 + $0x78] sm:$0xff]  ;;  %v189_v62 = vld [vmem:[%s879_s4 + $0x70] sm:$0xff] }
  0x23   : > { %588 = vmatpush3.msra.mxu0 %v215_v17  ;;  %v203_v60 = vmul.f32 %v187_v58, %v187_v58  ;;  %v206_v61 = vmul.f32 %v190_v59, %v190_v59  ;;  %v205_v63 = vmul.f32 %v189_v62, %v189_v62  ;;  %v344_v0 = vld [vmem:[%s1038_s2] sm:$0xff] }
  0x24   : > { %589 = vmatprep.subr.mxu0 %v230_v18  ;;  %657 = vmatprep.mubr.msk.f32.mxu1 %vm348_vm0, %v344_v0 }
  0x25   : > { %590 = vmatpush3.msra.mxu0 %v214_v19 }
  0x26   : > { %591 = vmatprep.subr.mxu0 %v229_v20 }
  0x27   : > { %592 = vmatpush3.msra.mxu0 %v213_v21 }
  0x28   : > { %593 = vmatprep.subr.mxu0 %v228_v22 }
  0x29   : > { %594 = vmatpush3.msra.mxu0 %v212_v23 }
  0x2a   : > { %595 = vmatprep.subr.mxu0 %v227_v24 }
  0x2b   : > { %596 = vmatpush3.msra.mxu0 %v211_v25  ;;  %v345_v25 = vld [vmem:[%s1038_s2 + $0x8] sm:$0xff] }
  0x2c   : > { %597 = vmatprep.subr.mxu0 %v226_v26  ;;  %v346_v26 = vld [vmem:[%s1038_s2 + $0x10] sm:$0xff] }
  0x2d   : > { %598 = vmatpush3.msra.mxu0 %v210_v27  ;;  %v347_v27 = vld [vmem:[%s1038_s2 + $0x18] sm:$0xff] }
  0x2e   : > { %599 = vmatprep.subr.mxu0 %v225_v28 }
  0x2f   : > { %600 = vmatpush3.msra.mxu0 %v209_v29 }
  0x30   : > { %601 = vmatprep.subr.mxu0 %v224_v30 }
  0x31   : > { %602 = vmatpush3.msra.mxu0 %v208_v32 }
  0x32   : > { %603 = vmatprep.subr.mxu0 %v223_v34 }
  0x33   : > { %604 = vmatpush3.msra.mxu0 %v207_v35 }
  0x34   : > { %304 = vmatmul.mubr.f32.vlgmr.msra.gmra.mxu0 %v191_v36 }
  0x35   : > { %308 = vmatprep.mubr.f32.mxu0 %v194_v37 }
  0x38   : > { %309 = vmatmul.mubr.f32.gmra.mxu0 %v193_v40 }
  0x39   : > { %313 = vmatprep.mubr.f32.mxu0 %v196_v41 }
  0x3c   : > { %314 = vmatmul.mubr.f32.gmra.mxu0 %v195_v44 }
  0x3d   : > { %318 = vmatprep.mubr.f32.mxu0 %v198_v45 }
  0x40   : > { %319 = vmatmul.mubr.f32.gmra.mxu0 %v197_v48 }
  0x41   : > { %323 = vmatprep.mubr.f32.mxu0 %v200_v49 }
  0x44   : > { %324 = vmatmul.mubr.f32.gmra.mxu0 %v199_v52 }
  0x45   : > { %328 = vmatprep.mubr.f32.mxu0 %v202_v53 }
  0x48   : > { %329 = vmatmul.mubr.f32.gmra.mxu0 %v201_v56 }
  0x49   : > { %333 = vmatprep.mubr.f32.mxu0 %v204_v57 }
  0x4c   : > { %334 = vmatmul.mubr.f32.gmra.mxu0 %v203_v60 }
  0x4d   : > { %338 = vmatprep.mubr.f32.mxu0 %v206_v61 }
  0x50   : > { %339 = vmatmul.mubr.f32.gmra.mxu0 %v205_v63 }
  0xf4   : > { %v605_v1 = vpop.f32.mrf.mxu0 }
  0xf6   : > { %v606_v2 = vpop.f32.mrf.mxu0 }
  0xf7   : > { %v607_v24 = vadd.f32 %v606_v2, %v605_v1 }
  0xf8   : > { %v608_v3 = vpop.f32.mrf.mxu0 }
  0xfa   : > { %v609_v4 = vpop.f32.mrf.mxu0 }
  0xfb   : > { %v610_v23 = vadd.f32 %v609_v4, %v608_v3 }
  0xfc   : > { %v611_v5 = vpop.f32.mrf.mxu0 }
  0xfe   : > { %v612_v6 = vpop.f32.mrf.mxu0 }
  0xff   : > { %v613_v22 = vadd.f32 %v612_v6, %v611_v5 }
 0x100   : > { %v614_v7 = vpop.f32.mrf.mxu0 }
 0x102   : > { %v615_v8 = vpop.f32.mrf.mxu0 }
 0x103   : > { %v616_v21 = vadd.f32 %v615_v8, %v614_v7 }
 0x104   : > { %v617_v9 = vpop.f32.mrf.mxu0 }
 0x106   : > { %v618_v10 = vpop.f32.mrf.mxu0 }
 0x107   : > { %v619_v20 = vadd.f32 %v618_v10, %v617_v9 }
 0x108   : > { %v620_v11 = vpop.f32.mrf.mxu0 }
 0x10a   : > { %v621_v12 = vpop.f32.mrf.mxu0 }
 0x10b   : > { %v622_v19 = vadd.f32 %v621_v12, %v620_v11 }
 0x10c   : > { %v623_v13 = vpop.f32.mrf.mxu0 }
 0x10e   : > { %v624_v14 = vpop.f32.mrf.mxu0 }
 0x10f   : > { %v625_v18 = vadd.f32 %v624_v14, %v623_v13 }
 0x110   : > { %v626_v15 = vpop.f32.mrf.mxu0 }
 0x112   : > { %v627_v16 = vpop.f32.mrf.mxu0 }
 0x113   : > { %v628_v17 = vadd.f32 %v627_v16, %v626_v15 }
 0x115   : > { %641 = vmatprep.subr.mxu1 %v628_v17 }
 0x116   : > { %642 = vmatpush3.msra.mxu1 %v628_v17 }
 0x117   : > { %643 = vmatprep.subr.mxu1 %v625_v18 }
 0x118   : > { %644 = vmatpush3.msra.mxu1 %v625_v18 }
 0x119   : > { %645 = vmatprep.subr.mxu1 %v622_v19 }
 0x11a   : > { %646 = vmatpush3.msra.mxu1 %v622_v19 }
 0x11b   : > { %647 = vmatprep.subr.mxu1 %v619_v20 }
 0x11c   : > { %648 = vmatpush3.msra.mxu1 %v619_v20 }
 0x11d   : > { %649 = vmatprep.subr.mxu1 %v616_v21 }
 0x11e   : > { %650 = vmatpush3.msra.mxu1 %v616_v21 }
 0x11f   : > { %651 = vmatprep.subr.mxu1 %v613_v22 }
 0x120   : > { %652 = vmatpush3.msra.mxu1 %v613_v22 }
 0x121   : > { %653 = vmatprep.subr.mxu1 %v610_v23 }
 0x122   : > { %654 = vmatpush3.msra.mxu1 %v610_v23 }
 0x123   : > { %655 = vmatprep.subr.mxu1 %v607_v24 }
 0x124   : > { %656 = vmatpush3.msra.mxu1 %v607_v24 }
 0x125   : > { %658 = vmatmul.mubr.msk.f32.vlgmr.msra.gmra.mxu1 %vm348_vm0, %v345_v25 }
 0x126   : > { %660 = vmatprep.mubr.msk.f32.mxu1 %vm348_vm0, %v346_v26 }
 0x129   : > { %661 = vmatmul.mubr.msk.f32.gmra.mxu1 %vm348_vm0, %v347_v27 }
 0x1e5   : > { %v659_v28 = vpop.f32.mrf.mxu1 }
 0x1e6   : > { %704 = vrsqrt.f32 %v659_v28  ;;  %vm455_vm1 = vcmp.eq.f32.partialorder %v659_v28, inf  ;;  %v458_v35 = vand.u32 2147483648, %v659_v28  ;;  %vm457_vm2 = vcmp.eq.f32.partialorder %v659_v28, 0.0 }
 0x1e7   : > { %v427_v29 = vpop.f32.mrf.mxu1 }
 0x1e8   : > { %706 = vrsqrt.f32 %v427_v29  ;;  %vm448_vm3 = vcmp.eq.f32.partialorder %v427_v29, inf  ;;  %v451_v40 = vand.u32 2147483648, %v427_v29  ;;  %vm450_vm4 = vcmp.eq.f32.partialorder %v427_v29, 0.0 }
 0x1e9   : > { %v662_v30 = vpop.f32.mrf.mxu1 }
 0x1ea   : > { %708 = vrsqrt.f32 %v662_v30  ;;  %vm469_vm5 = vcmp.eq.f32.partialorder %v662_v30, inf  ;;  %v472_v45 = vand.u32 2147483648, %v662_v30  ;;  %vm471_vm6 = vcmp.eq.f32.partialorder %v662_v30, 0.0 }
 0x1eb   : > { %v437_v31 = vpop.f32.mrf.mxu1 }
 0x1ec   : > { %710 = vrsqrt.f32 %v437_v31  ;;  %vm462_vm7 = vcmp.eq.f32.partialorder %v437_v31, inf  ;;  %v465_v49 = vand.u32 2147483648, %v437_v31  ;;  %vm464_vm8 = vcmp.eq.f32.partialorder %v437_v31, 0.0 }
 0x1f3   : > { %v705_v32 = vpop.eup %704 }
 0x1f4   : > { %v454_v33 = vmul.f32 %v705_v32, %v659_v28 }
 0x1f5   : > { %v707_v34 = vpop.eup %706 }
 0x1f6   : > { %v456_v36 = vsel %vm455_vm1, %v659_v28, %v454_v33  ;;  %v447_v37 = vmul.f32 %v707_v34, %v427_v29 }
 0x1f7   : > { %v709_v38 = vpop.eup %708  ;;  %v459_v39 = vsel %vm457_vm2, %v458_v35, %v456_v36 }
 0x1f8   : > { %475 = vst.msk [vmem:[%s166_s30 + $0x8] sm:$0xff] %vm348_vm0, %v459_v39  ;;  %v449_v41 = vsel %vm448_vm3, %v427_v29, %v447_v37  ;;  %v468_v42 = vmul.f32 %v709_v38, %v662_v30 }
 0x1f9   : > { %v711_v43 = vpop.eup %710  ;;  %v452_v44 = vsel %vm450_vm4, %v451_v40, %v449_v41 }
 0x1fa   : > { %474 = vst.msk [vmem:[%s166_s30] sm:$0xff] %vm348_vm0, %v452_v44  ;;  %v470_v46 = vsel %vm469_vm5, %v662_v30, %v468_v42  ;;  %v461_v47 = vmul.f32 %v711_v43, %v437_v31 }
 0x1fb   : > { %v473_v48 = vsel %vm471_vm6, %v472_v45, %v470_v46 }
 0x1fc   : > { %477 = vst.msk [vmem:[%s166_s30 + $0x18] sm:$0xff] %vm348_vm0, %v473_v48  ;;  %v463_v50 = vsel %vm462_vm7, %v437_v31, %v461_v47 }
 0x1fd   : > { %v466_v51 = vsel %vm464_vm8, %v465_v49, %v463_v50 }
 0x1fe   : > { %476 = vst.msk [vmem:[%s166_s30 + $0x10] sm:$0xff] %vm348_vm0, %v466_v51 }
 0x1ff   : > { %725 = shalt.err (!%p722_p3)
}
 0x200   : > { %s726_s4 = scalar_lea.hbm %s988_s11, 512  ;;  %s730_s27 = scalar_lea.hbm %s1039_s3, 1024 }
 0x201   : > { %p727_p4 = scmp.ne.s32.totalorder %s988_s11, %s726_s4  ;;  %p731_p9 = scmp.lt.s32.totalorder %s988_s11, %s1039_s3 }
 0x202   : > { %p732_p10 = scmp.lt.s32.totalorder %s730_s27, %s726_s4 }
 0x203   : > { %p728_p7 = pnand %p727_p4, %p835_p5 }
 0x204   : > { %p733_p11 = por %p732_p10, %p731_p9 }
 0x205   : > { %p729_p8 = pneg %p728_p7 }
 0x207   : > { %p734_p12 = pnand %p733_p11, %p729_p8 }
 0x209   : > { %737 = shalt.err (!%p734_p12)
}
 0x20a   : > { %s775_s5 = smov 128   ;;  %s776_s6 = smov 8  }
 0x20b   : > { %663 = dma.vmem_to_hbm [thread:$0]  (%p835_p5), %s990_s8, 512, %s988_s11, %s996_s16, %s775_s5, %s775_s5, %s776_s6  }
 0x20c PF: > { %p669_p13 = scmp.ge.s32.totalorder %s772_s15, 2  ;;  %s507_s30 = sand.u32 1, %s760_s12  }
 0x20d   : > { %s508_s7 = scalar_lea.sflag [#allocation3], %s507_s30 }
 0x20e   : > { %p666_p0 = pnand %p669_p13, %p839_p6 }
 0x210   : > { %p667_p1 = pneg %p666_p0 }
 0x212   : > { %755 = dma.done.wait (%p667_p1), %s508_s7, 512  }
 0x213   : > { %757 = vsyncadd (%p667_p1), %s508_s7, 4294966784  ;;  %p13_p2 = scmp.ge.s32.totalorder %s822_s18, 4   ;;  %s1042_s12 = smov %s764_s13 }
 0x214   : > { %s1043_s13 = smov %s768_s14  ;;  %s1044_s14 = smov %s833_s21 }
 0x215   : > { %s1045_s15 = smov %s822_s18  ;;  %15 = sbr.rel (!%p13_p2) target bundleno = 3 (0x3), region = 67 }
 0x21a   :  { %513 = vsyncpa [#allocation3], 1 }
 0x21b   :  { %515 = vsyncpa [#allocation3 + $0x1], 1 }

</bundles_post_ra>
